<compile_context>
chip_gen: v6e
topology: v6e:2x2x1
jax: 0.10.0
libtpu: 0.0.40
codegen_flags: <defaults>
</compile_context>

<pallas_src>
import functools

import jax
import jax.numpy as jnp
from jax.experimental import pallas as pl
from jax.experimental.pallas import tpu as pltpu

_BN_EPS = 1e-5
_LANE = 128
_MAX_TILE_B = 1024


def _round_up(x, m):
    return (x + m - 1) // m * m


def _vmem_capacity_bytes():
    try:
        return int(pltpu.get_tpu_info().vmem_capacity_bytes)
    except Exception:
        return 64 * 1024 * 1024  # conservative (v7x-sized) fallback


# ----------------------------------------------------------------------------
# Kernels
# ----------------------------------------------------------------------------
def _fused_kernel(h_ref, w_ref, g_ref, b_ref, o_ref, *, batch_size, num_topics):
    # Single-block path, everything resident in VMEM.
    # h:[B,H] (act dtype)  w:[H,T_pad] (act dtype)  g,b:[1,T_pad] f32  o:[B,T] f32
    y = jnp.dot(h_ref[...], w_ref[...], preferred_element_type=jnp.float32)
    inv_b = jnp.float32(1.0 / batch_size)
    mean = jnp.sum(y, axis=0, keepdims=True) * inv_b
    d = y - mean
    var = jnp.sum(d * d, axis=0, keepdims=True) * inv_b      # centered (stable)
    scale = g_ref[...] * jax.lax.rsqrt(var + _BN_EPS)         # gamma folded in
    z = d * scale + b_ref[...]
    o_ref[...] = jnp.exp(z[:, :num_topics]).astype(o_ref.dtype)


def _two_sweep_kernel(h_ref, w_ref, g_ref, b_ref, o_ref,
                      pivot_ref, sum_ref, sq_ref, scale_ref, shift_ref,
                      *, batch_size, tile_b, num_topics):
    # Single pallas_call, grid=(2, num_tiles):
    #   sweep 0: per-tile matmul + global shifted moments -> scale/shift scratch
    #   sweep 1: recompute the matmul (re-reading h is cheaper than an HBM
    #            round trip of y), FMA + exp, write the true-T output.
    sweep = pl.program_id(0)
    i = pl.program_id(1)
    num_tiles = pl.num_programs(1)

    y = jnp.dot(h_ref[...], w_ref[...], preferred_element_type=jnp.float32)

    # Row-validity mask for the (possibly partial) last batch tile.
    row = jax.lax.broadcasted_iota(jnp.int32, (tile_b, 1), 0) + i * tile_b
    valid = row < batch_size

    @pl.when(sweep == 0)
    def _moments():
        @pl.when(i == 0)
        def _init():
            rows0 = min(tile_b, batch_size)  # static
            pivot_ref[...] = (jnp.sum(jnp.where(valid, y, 0.0),
                                      axis=0, keepdims=True)
                              * jnp.float32(1.0 / rows0))
            sum_ref[...] = jnp.zeros_like(sum_ref)
            sq_ref[...] = jnp.zeros_like(sq_ref)

        # Shifted accumulation around the first tile's per-feature mean keeps
        # the one-pass variance well conditioned.
        d = jnp.where(valid, y - pivot_ref[...], 0.0)
        sum_ref[...] += jnp.sum(d, axis=0, keepdims=True)
        sq_ref[...] += jnp.sum(d * d, axis=0, keepdims=True)

        @pl.when(i == num_tiles - 1)
        def _finalize():
            inv_b = jnp.float32(1.0 / batch_size)
            m1 = sum_ref[...] * inv_b
            var = jnp.maximum(sq_ref[...] * inv_b - m1 * m1, 0.0)
            mean = pivot_ref[...] + m1
            scale = g_ref[...] * jax.lax.rsqrt(var + _BN_EPS)
            scale_ref[...] = scale
            shift_ref[...] = b_ref[...] - mean * scale

    @pl.when(sweep == 1)
    def _normalize():
        z = y * scale_ref[...] + shift_ref[...]
        o_ref[...] = jnp.exp(z[:, :num_topics]).astype(o_ref.dtype)


# ----------------------------------------------------------------------------
# Wrapper
# ----------------------------------------------------------------------------
def hidden_to_dirichlet(hidden, fc_weight, fc_bias, bn_weight, bn_bias,
                        *, tile_b=None, force_tiled=False):
    """alphas = exp(BatchNorm1d(Linear(hidden))) with training-mode batch stats.

    hidden:    [B, H]  (f32 or bf16 -- fed to the MXU in its native dtype)
    fc_weight: [T, H]  (PyTorch nn.Linear layout)
    fc_bias:   [T]     (unused: exactly cancelled by the BN mean subtraction;
                        must be reinstated if eval-mode running stats are used)
    bn_weight: [T]
    bn_bias:   [T]
    Returns alphas [B, T] float32 (Dirichlet concentration parameters).
    """
    del fc_bias  # per-feature constant shift cancels with the batch mean.

    B, H = hidden.shape
    T = fc_weight.shape[0]
    T_pad = _round_up(T, _LANE)
    act_dtype = hidden.dtype
    itemsize = jnp.dtype(act_dtype).itemsize

    # Parameter prep (hoist to parameter-load time in a real model):
    # weight pre-transposed to the canonical [K, N] = [H, T_pad] MXU layout and
    # stored in the activation dtype (bf16 stays bf16 -> full-rate MXU, half
    # the weight DMA bytes).
    w_pad = jnp.pad(fc_weight.T.astype(act_dtype), ((0, 0), (0, T_pad - T)))
    g_pad = jnp.pad(bn_weight.astype(jnp.float32), (0, T_pad - T)).reshape(1, T_pad)
    beta_pad = jnp.pad(bn_bias.astype(jnp.float32), (0, T_pad - T)).reshape(1, T_pad)

    # Generation-aware VMEM budgeting (v5e/v6e: 128 MiB, v7x: 64 MiB physical).
    phys_vmem = _vmem_capacity_bytes()
    vmem_limit = int(phys_vmem * 0.75)   # scoped limit we request from Mosaic
    budget = int(vmem_limit * 0.80)      # plan our own buffers against this

    # Fused single-block footprint (generous allowance for elementwise temps).
    fused_bytes = (itemsize * (B * H + H * T_pad)
                   + 4 * (3 * B * T_pad + B * T + 8 * T_pad))
    use_fused = (not force_tiled) and fused_bytes <= budget

    if use_fused:
        vmem = pl.BlockSpec(memory_space=pltpu.MemorySpace.VMEM)
        return pl.pallas_call(
            functools.partial(_fused_kernel, batch_size=B, num_topics=T),
            out_shape=jax.ShapeDtypeStruct((B, T), jnp.float32),
            in_specs=[vmem] * 4,
            out_specs=vmem,
            compiler_params=pltpu.CompilerParams(vmem_limit_bytes=vmem_limit),
            cost_estimate=pl.CostEstimate(
                flops=2 * B * H * T_pad + 8 * B * T_pad,
                transcendentals=B * T_pad,
                bytes_accessed=itemsize * (B * H + H * T_pad) + 4 * B * T),
        )(hidden, w_pad, g_pad, beta_pad)

    # ---------------- Tiled two-sweep path (any B; masked last tile) ---------
    if tile_b is None:
        const = 2 * itemsize * H * T_pad + 4 * 16 * T_pad
        per_row = 2 * itemsize * H + 4 * (3 * T_pad + 2 * T)
        tb = max(8, min((budget - const) // per_row, _MAX_TILE_B, _round_up(B, 8)))
        tb = int(tb) // 8 * 8
    else:
        tb = int(tile_b)
        assert tb % 8 == 0, "tile_b must be a multiple of 8"
    num_tiles = pl.cdiv(B, tb)

    grid_spec = pltpu.PrefetchScalarGridSpec(
        num_scalar_prefetch=0,
        grid=(2, num_tiles),
        in_specs=[
            pl.BlockSpec((tb, H), lambda s, i: (i, 0)),
            # Constant-index operands: fetched once, stay resident.
            pl.BlockSpec((H, T_pad), lambda s, i: (0, 0)),
            pl.BlockSpec((1, T_pad), lambda s, i: (0, 0)),
            pl.BlockSpec((1, T_pad), lambda s, i: (0, 0)),
        ],
        # Output block index is pinned to 0 during sweep 0 (nothing is written
        # to it), so no garbage block is ever flushed to HBM; sweep 1 then
        # walks the real blocks -> exactly one B*T write-back.
        out_specs=pl.BlockSpec((tb, T), lambda s, i: (s * i, 0)),
        scratch_shapes=[pltpu.VMEM((1, T_pad), jnp.float32)] * 5,
    )
    return pl.pallas_call(
        functools.partial(_two_sweep_kernel, batch_size=B, tile_b=tb,
                          num_topics=T),
        out_shape=jax.ShapeDtypeStruct((B, T), jnp.float32),
        grid_spec=grid_spec,
        compiler_params=pltpu.CompilerParams(
            dimension_semantics=("arbitrary", "arbitrary"),
            vmem_limit_bytes=vmem_limit),
        cost_estimate=pl.CostEstimate(
            flops=4 * B * H * T_pad + 10 * B * T_pad,
            transcendentals=B * T_pad,
            bytes_accessed=(itemsize * (2 * B * H + H * T_pad)
                            + 4 * (B * T + 4 * T_pad))),
    )(hidden, w_pad, g_pad, beta_pad)


# ----------------------------------------------------------------------------
# Reference (faithful to the PyTorch module in training mode, incl. fc bias)
# ----------------------------------------------------------------------------
def _reference(hidden, fc_weight, fc_bias, bn_weight, bn_bias):
    y = hidden @ fc_weight.T + fc_bias
    mean = jnp.mean(y, axis=0, keepdims=True)
    var = jnp.mean((y - mean) ** 2, axis=0, keepdims=True)
    return jnp.exp((y - mean) / jnp.sqrt(var + _BN_EPS) * bn_weight + bn_bias)


if __name__ == "__main__":
    key = jax.random.PRNGKey(0)
    B, H, T = 8, 32, 16  # batch, hidden_size, num_topics

    k_h, k_w, k_b, k_g, k_bb, k_h2 = jax.random.split(key, 6)
    hidden = jax.random.normal(k_h, (B, H), dtype=jnp.float32)

    bound = 1.0 / jnp.sqrt(jnp.float32(H))
    fc_weight = jax.random.uniform(k_w, (T, H), jnp.float32, -bound, bound)
    fc_bias = jax.random.uniform(k_b, (T,), jnp.float32, -bound, bound)
    bn_weight = 1.0 + 0.1 * jax.random.normal(k_g, (T,), jnp.float32)
    bn_bias = 0.1 * jax.random.normal(k_bb, (T,), jnp.float32)

    # 1) Small batch -> single fused-kernel path (f32 activations).
    alphas = jax.block_until_ready(
        hidden_to_dirichlet(hidden, fc_weight, fc_bias, bn_weight, bn_bias))
    ref = _reference(hidden, fc_weight, fc_bias, bn_weight, bn_bias)
    assert alphas.shape == (B, T)
    assert bool(jnp.all(alphas > 0.0))          # valid Dirichlet concentrations
    assert bool(jnp.allclose(alphas, ref, rtol=1e-4, atol=1e-4))

    # 2) Larger, non-multiple-of-8 batch forced through the tiled two-sweep
    #    path (4 batch tiles, masked last tile).
    B2 = 100
    hidden2 = jax.random.normal(k_h2, (B2, H), dtype=jnp.float32)
    alphas2 = jax.block_until_ready(
        hidden_to_dirichlet(hidden2, fc_weight, fc_bias, bn_weight, bn_bias,
                            tile_b=32, force_tiled=True))
    ref2 = _reference(hidden2, fc_weight, fc_bias, bn_weight, bn_bias)
    assert alphas2.shape == (B2, T)
    assert bool(jnp.all(alphas2 > 0.0))
    assert bool(jnp.allclose(alphas2, ref2, rtol=1e-4, atol=1e-4))

    # 3) bf16 activations feed the MXU directly (no f32 up-cast in the wrapper).
    hidden_bf16 = hidden.astype(jnp.bfloat16)
    alphas3 = jax.block_until_ready(
        hidden_to_dirichlet(hidden_bf16, fc_weight, fc_bias, bn_weight, bn_bias))
    assert alphas3.shape == (B, T)
    assert bool(jnp.all(jnp.isfinite(alphas3))) and bool(jnp.all(alphas3 > 0.0))
    assert bool(jnp.allclose(alphas3, ref, rtol=1e-1, atol=1e-1))

    # TODO(synk): torch.distributions.Dirichlet / .cpu() have no JAX/Pallas
    # equivalent; the kernels return the concentration parameters `alphas`.
    print("KERNEL_OK")
</pallas_src>

<mosaic_0001>
module attributes {stable_mosaic.version = 11 : i64} {
  func.func @_fused_kernel(%arg0: memref<8x32xf32, #tpu.memory_space<vmem>>, %arg1: memref<32x128xf32, #tpu.memory_space<vmem>>, %arg2: memref<1x128xf32, #tpu.memory_space<vmem>>, %arg3: memref<1x128xf32, #tpu.memory_space<vmem>>, %arg4: memref<8x16xf32, #tpu.memory_space<vmem>>) attributes {dimension_semantics = [], scalar_prefetch = 0 : i64, scratch_operands = 0 : i64, tpu.core_type = #tpu.core_type<tc>} {
    %c0 = arith.constant 0 : index
    %c0_0 = arith.constant 0 : index
    %0 = vector.load %arg0[%c0, %c0_0] : memref<8x32xf32, #tpu.memory_space<vmem>>, vector<8x32xf32>
    %c0_1 = arith.constant 0 : index
    %c0_2 = arith.constant 0 : index
    %1 = vector.load %arg1[%c0_1, %c0_2] : memref<32x128xf32, #tpu.memory_space<vmem>>, vector<32x128xf32>
    %cst = arith.constant dense<0.000000e+00> : vector<8x128xf32>
    %2 = tpu.matmul %0, %1, %cst {dimension_numbers = #tpu.dot_dimension_numbers<[1], [0], [0], [1], [0, 0, 1, 1], [], []>} : vector<8x32xf32>, vector<32x128xf32>, vector<8x128xf32> -> vector<8x128xf32>
    %cst_3 = arith.constant dense<0.000000e+00> : vector<128xf32>
    %3 = vector.multi_reduction <add>, %2, %cst_3 [0] : vector<8x128xf32> to vector<128xf32>
    %4 = vector.shape_cast %3 : vector<128xf32> to vector<1x128xf32>
    %cst_4 = arith.constant 1.250000e-01 : f32
    %5 = vector.broadcast %cst_4 : f32 to vector<1x128xf32>
    %6 = arith.mulf %4, %5 : vector<1x128xf32>
    %7 = vector.broadcast %6 : vector<1x128xf32> to vector<8x128xf32>
    %8 = arith.subf %2, %7 : vector<8x128xf32>
    %9 = arith.mulf %8, %8 : vector<8x128xf32>
    %cst_5 = arith.constant dense<0.000000e+00> : vector<128xf32>
    %10 = vector.multi_reduction <add>, %9, %cst_5 [0] : vector<8x128xf32> to vector<128xf32>
    %11 = vector.shape_cast %10 : vector<128xf32> to vector<1x128xf32>
    %cst_6 = arith.constant 1.250000e-01 : f32
    %12 = vector.broadcast %cst_6 : f32 to vector<1x128xf32>
    %13 = arith.mulf %11, %12 : vector<1x128xf32>
    %c0_7 = arith.constant 0 : index
    %c0_8 = arith.constant 0 : index
    %14 = vector.load %arg2[%c0_7, %c0_8] : memref<1x128xf32, #tpu.memory_space<vmem>>, vector<1x128xf32>
    %cst_9 = arith.constant 9.99999974E-6 : f32
    %15 = vector.broadcast %cst_9 : f32 to vector<1x128xf32>
    %16 = arith.addf %13, %15 : vector<1x128xf32>
    %17 = math.rsqrt %16 : vector<1x128xf32>
    %18 = arith.mulf %14, %17 : vector<1x128xf32>
    %19 = vector.broadcast %18 : vector<1x128xf32> to vector<8x128xf32>
    %20 = arith.mulf %8, %19 : vector<8x128xf32>
    %c0_10 = arith.constant 0 : index
    %c0_11 = arith.constant 0 : index
    %21 = vector.load %arg3[%c0_10, %c0_11] : memref<1x128xf32, #tpu.memory_space<vmem>>, vector<1x128xf32>
    %22 = vector.broadcast %21 : vector<1x128xf32> to vector<8x128xf32>
    %23 = arith.addf %20, %22 : vector<8x128xf32>
    %24 = vector.extract_strided_slice %23 {offsets = [0, 0], sizes = [8, 16], strides = [1, 1]} : vector<8x128xf32> to vector<8x16xf32>
    %25 = math.exp %24 : vector<8x16xf32>
    %c0_12 = arith.constant 0 : index
    %c0_13 = arith.constant 0 : index
    %26 = vector.load %arg4[%c0_12, %c0_13] : memref<8x16xf32, #tpu.memory_space<vmem>>, vector<8x16xf32>
    tpu.vector_store %arg4[%c0_12, %c0_13], %25 {strides = array<i32>} : memref<8x16xf32, #tpu.memory_space<vmem>>, vector<8x16xf32>,
    return
  }
}

</mosaic_0001>

<bundles_post_ra>
// kernel: tpu_custom_call.1
= control target key start
LH: loop header
LB: loop body
LE: loop exit
PB: predicated region body
PF: predicated region fallthrough
CT: control target
= control target key end

     0   :  { %9 = vsyncpa [#allocation3], 0  ;;  %s320_s0 = inlined_call_operand.hbm [shape: f32[8,32], index: 0, kind: input, shape index: {}]   ;;  %s321_s1 = inlined_call_operand.hbm [shape: f32[32,128], index: 1, kind: input, shape index: {}]   ;;  %s322_s2 = inlined_call_operand.vmem [shape: f32[1,128], index: 2, kind: input, shape index: {}]   ;;  %s323_s3 = inlined_call_operand.vmem [shape: f32[1,128], index: 3, kind: input, shape index: {}]   ;;  %s324_s4 = inlined_call_operand.hbm [shape: f32[8,16], index: 4, kind: output, shape index: {}]  }
   0x1   :  { %10 = vsyncpa [#allocation6], 0 }
   0x2   :  { %11 = vsyncpa [#allocation4], 0  ;;  %s273_s15 = smov [#allocation2]   ;;  %s274_s17 = smov [#allocation5]  }
   0x3   :  { %s18_s16 = sshll.u32 %s273_s15, 4  ;;  %s27_s18 = sshll.u32 %s274_s17, 4  ;;  %s19_s16 = int_to_ptr.vmem [resolvable:$true] %s18_s16  ;;  %s28_s18 = int_to_ptr.vmem [resolvable:$true] %s27_s18 }
   0x4   :  { %s215_s19 = scalar_lea.vmem %s19_s16, 128  ;;  %p220_p1 = scmp.lt.s32.totalorder %s19_s16, %s19_s16 }
   0x5   :  { %p216_p0 = scmp.ne.s32.totalorder %s19_s16, %s215_s19  ;;  %p221_p2 = scmp.lt.s32.totalorder %s215_s19, %s215_s19 }
   0x7   :  { %p222_p3 = por %p221_p2, %p220_p1 }
   0x9   :  { %p223_p4 = pnand %p222_p3, %p216_p0 }
   0xb   :  { %226 = shalt.err (!%p223_p4)
}
   0xc   :  { %21 = dma.hbm_to_vmem [thread:$0]  %s320_s0, 128, %s19_s16, [#allocation3]  }
   0xd   :  { %s235_s22 = scalar_lea.vmem %s28_s18, 512  ;;  %p240_p6 = scmp.lt.s32.totalorder %s28_s18, %s28_s18 }
   0xe   :  { %p236_p5 = scmp.ne.s32.totalorder %s28_s18, %s235_s22  ;;  %p241_p7 = scmp.lt.s32.totalorder %s235_s22, %s235_s22 }
  0x10   :  { %p242_p8 = por %p241_p7, %p240_p6 }
  0x12   :  { %p243_p9 = pnand %p242_p8, %p236_p5 }
  0x14   :  { %246 = shalt.err (!%p243_p9)
}
  0x15   :  { %s275_s23 = smov 128   ;;  %s276_s24 = smov 8  }
  0x16   :  { %33 = dma.hbm_to_vmem [thread:$0]  %s321_s1, 512, %s28_s18, [#allocation6], %s275_s23, %s275_s23, %s276_s24  }
  0x17   :  { %267 = dma.done.wait [#allocation3], 128  }
  0x18   :  { %268 = vsyncadd [#allocation3], 4294967168 }
  0x19   :  { %269 = dma.done.wait [#allocation6], 512  }
  0x1a   :  { %270 = vsyncadd [#allocation6], 4294966784  ;;  %v277_v0 = vmov 0.0   ;;  %vm278_vm0 = vmmov 0   ;;  %v48_v1 = vld [vmem:[#allocation5 + $0x18] sm:$0xff]  ;;  %v47_v2 = vld [vmem:[#allocation5 + $0x10] sm:$0xff]  ;;  %v144_v25 = vlaneseq }
  0x1b   :  { %185 = vmatprep.subr.mxu0 %v277_v0  ;;  %193 = vmatprep.mubr.msk.f32.mxu0 %vm278_vm0, %v277_v0  ;;  %v46_v3 = vld [vmem:[#allocation5 + $0x8] sm:$0xff]  ;;  %v45_v4 = vld [vmem:[#allocation5] sm:$0xff]  ;;  %v44_v5 = vld [vmem:[#allocation2] sm:$0xff]  ;;  %vm49_vm1 = vcmask 261120   ;;  %s279_s29 = smov [#allocation7]   ;;  %vm160_vm2 = vcmask 130048  }
  0x1c   :  { %186 = vmatpush3.msra.mxu0 %v48_v1  ;;  %v145_v26 = vshrl.u32 %v144_v25, 7  ;;  %v139_v27 = vld [vmem:[%s322_s2] sm:$0x1]  ;;  %s168_s30 = sshll.u32 %s279_s29, 4  ;;  %s169_s30 = int_to_ptr.vmem [resolvable:$true] %s168_s30 }
  0x1d   :  { %187 = vmatprep.subr.mxu0 %v277_v0  ;;  %v179_v32 = vld [vmem:[%s323_s3] ss:$0 sm:$0xff]  ;;  %s247_s5 = scalar_lea.vmem %s169_s30, 128  ;;  %p252_p11 = scmp.lt.s32.totalorder %s169_s30, %s169_s30 }
  0x1e   :  { %188 = vmatpush3.msra.mxu0 %v47_v2  ;;  %v146_v28 = vsub.s32 0, %v145_v26  ;;  %p248_p10 = scmp.ne.s32.totalorder %s169_s30, %s247_s5  ;;  %p253_p12 = scmp.lt.s32.totalorder %s247_s5, %s247_s5 }
  0x1f   :  { %189 = vmatprep.subr.mxu0 %v277_v0 }
  0x20   :  { %190 = vmatpush3.msra.mxu0 %v46_v3  ;;  %p254_p13 = por %p253_p12, %p252_p11 }
  0x21   :  { %191 = vmatprep.subr.mxu0 %v277_v0 }
  0x22   :  { %192 = vmatpush3.msra.mxu0 %v45_v4  ;;  %p255_p0 = pnand %p254_p13, %p248_p10 }
  0x23   :  { %194 = vmatmul.mubr.msk.f32.vlgmr.msra.gmra.mxu0 %vm49_vm1, %v44_v5 }
  0xe3   :  { %v119_v6 = vpop.f32.mrf.mxu0 }
  0xe4   :  { %v123_v7 = vrot.slane %v119_v6, 4 }
  0xe5   :  { %v195_v8 = vpop.f32.mrf.mxu0 }
  0xe6   :  { %v124_v9 = vadd.f32 %v123_v7, %v119_v6 }
  0xe8   :  { %v125_v10 = vrot.slane %v124_v9, 2 }
  0xea   :  { %v126_v11 = vadd.f32 %v125_v10, %v124_v9 }
  0xec   :  { %v127_v12 = vrot.slane %v126_v11, 1 }
  0xee   :  { %v128_v13 = vadd.f32 %v127_v12, %v126_v11 }
  0xf0   :  { %v129_v14 = vmul.f32 0.125, %v128_v13 }
  0xf2   :  { %v130_v15 = vsub.f32 %v119_v6, %v129_v14 }
  0xf4   :  { %v131_v16 = vmul.f32 %v130_v15, %v130_v15 }
  0xf6   :  { %v132_v17 = vrot.slane %v131_v16, 4 }
  0xf8   :  { %v133_v18 = vadd.f32 %v132_v17, %v131_v16 }
  0xfa   :  { %v134_v19 = vrot.slane %v133_v18, 2 }
  0xfc   :  { %v135_v20 = vadd.f32 %v134_v19, %v133_v18 }
  0xfe   :  { %v136_v21 = vrot.slane %v135_v20, 1 }
 0x100   :  { %v137_v22 = vadd.f32 %v136_v21, %v135_v20 }
 0x102   :  { %v138_v23 = vmul.f32 0.125, %v137_v22 }
 0x104   :  { %v140_v24 = vadd.f32 1e-05, %v138_v23 }
 0x106   :  { %203 = vrsqrt.f32 %v140_v24 }
 0x113   :  { %v204_v29 = vpop.eup %203 }
 0x114   :  { %v142_v30 = vmul.f32 %v204_v29, %v139_v27 }
 0x116   :  { %v147_v31 = vrot.slane %v142_v30, %v146_v28 }
 0x118   :  { %v149_v33 = vmul.f32 %v147_v31, %v130_v15 }
 0x11a   :  { %v157_v34 = vadd.f32 %v179_v32, %v149_v33 }
 0x11c   :  { %v158_v35 = vmul.f32 1.442695, %v157_v34 }
 0x11e   :  { %205 = vpow2.f32 %v158_v35 }
 0x12b   :  { %v206_v36 = vpop.eup %205 }
 0x12c   :  { %161 = vst.msk [vmem:[#allocation7] sm:$0xff] %vm160_vm2, %v206_v36 }
 0x12d   :  { %258 = shalt.err (!%p255_p0)
}
 0x12e   :  { %171 = dma.vmem_to_hbm [thread:$0]  %s169_s30, 128, %s324_s4, [#allocation4]  }
 0x12f   :  { %271 = dma.done.wait [#allocation4], 128  }
 0x130   :  { %272 = vsyncadd [#allocation4], 4294967168 }
 0x131   :  { %175 = vsyncpa [#allocation3], 1 }
 0x132   :  { %176 = vsyncpa [#allocation6], 1 }
 0x133   :  { %177 = vsyncpa [#allocation4], 1 }

</bundles_post_ra>
